<compile_context>
chip_gen: v6e
topology: v6e:2x2x1
jax: 0.10.0
libtpu: 0.0.40
codegen_flags: <defaults>
</compile_context>

<pallas_src>
import functools

import jax
import jax.numpy as jnp
from jax import lax
from jax.experimental import pallas as pl
from jax.experimental.pallas import tpu as pltpu

_NEG_LARGE = -1e30  # finite "minus infinity": no NaN if a row is fully masked


def _sdpa_kernel(*refs, inv_temperature, has_mask, return_attn):
    it = iter(refs)
    q_ref = next(it)
    k_ref = next(it)
    v_ref = next(it)
    mask_ref = next(it) if has_mask else None
    out_ref = next(it)
    attn_ref = next(it) if return_attn else None

    # Fold the temperature into q: (TQ, D) elements instead of (TQ, Lk).
    q = q_ref[0] * inv_temperature          # (TQ, D), input dtype
    k = k_ref[0]                            # (Lk, D)
    v = v_ref[0]                            # (Lk, Dv)

    # s = (q / temperature) @ k^T, contracting over D directly on the MXU
    # (no explicit k.T relayout), f32 accumulation.
    s = lax.dot_general(
        q, k,
        dimension_numbers=(((1,), (1,)), ((), ())),
        preferred_element_type=jnp.float32,
    )                                       # (TQ, Lk) f32

    if has_mask:
        # int8 mask consumed directly: compare+select on the VPU (free filler).
        s = jnp.where(mask_ref[0] != 0, _NEG_LARGE, s)

    # Numerically stable softmax over the key axis, in f32.
    s_max = jnp.max(s, axis=-1, keepdims=True)
    e = jnp.exp(s - s_max)
    denom = jnp.sum(e, axis=-1, keepdims=True)
    p = e * pl.reciprocal(denom, approx=True)   # divide -> EUP slot

    if return_attn:
        attn_ref[0] = p.astype(attn_ref.dtype)

    out = jnp.dot(p.astype(v.dtype), v, preferred_element_type=jnp.float32)
    out_ref[0] = out.astype(out_ref.dtype)


def _round_up(x, m):
    return ((x + m - 1) // m) * m


def _vmem_capacity_bytes():
    # Generation-aware VMEM budget (128 MiB on v5e/v6e, 64 MiB on v7x).
    try:
        return int(pltpu.get_tpu_info().vmem_capacity_bytes)
    except Exception:
        return 64 << 20  # conservative fallback (works on every generation)


def _choose_tq(lq, fits):
    """Largest query tile whose per-step VMEM footprint fits the budget."""
    # (a) small Lq: one full-extent (8-padded) tile.
    if lq <= 512:
        t = lq if (lq % 8 == 0 or lq < 8) else _round_up(lq, 8)
        if fits(t):
            return t
    # (b) large (>=128) tiles: exact divisor preferred, else minimal padding.
    best = None
    for t in (512, 256, 128):
        if t <= lq and fits(t):
            padded = _round_up(lq, t)
            if padded == lq:
                return t
            if best is None or padded < best[1] or (padded == best[1] and t > best[0]):
                best = (t, padded)
    if best is not None:
        return best[0]
    # (c) VMEM-constrained: small tiles, first fit.
    for t in (64, 32, 16, 8):
        if fits(t):
            return t
    return 8


def scaled_dot_product_attention(q, k, v, temperature, mask=None, *,
                                 return_attn=True, attn_dtype=None):
    """Eval-mode forward of the PyTorch module. Returns (output, attn).

    return_attn=False skips the (large) attention-weights HBM write stream and
    returns (output, None).  attn_dtype (e.g. jnp.bfloat16) halves that stream
    when the weights must be kept; default matches the module (q.dtype).
    """
    B, Lq, D = q.shape
    Bk, Lk, Dk = k.shape
    Bv, Lkv, Dv = v.shape
    assert Bk == B and Bv == B and Dk == D and Lkv == Lk

    has_mask = mask is not None
    out_dt = jnp.dtype(q.dtype)
    attn_dt = jnp.dtype(q.dtype if attn_dtype is None else attn_dtype)
    in_itm = jnp.dtype(q.dtype).itemsize

    capacity = _vmem_capacity_bytes()
    budget = int(0.80 * capacity)

    def step_bytes(tq, kv_buffers):
        resident = kv_buffers * Lk * (D + Dv) * in_itm           # K, V
        streamed = 2 * tq * (D * in_itm + Dv * out_dt.itemsize)  # q, out (x2 buf)
        if has_mask:
            streamed += 2 * tq * Lk                              # int8 mask
        if return_attn:
            streamed += 2 * tq * Lk * attn_dt.itemsize           # attn write
        interm = 3 * tq * Lk * 4 + tq * D * 4                    # f32 s/e/p + q
        return resident + streamed + interm

    # Budget assuming double-buffered K/V so the no-pipeline_mode fallback fits too.
    TQ = _choose_tq(Lq, lambda t: step_bytes(t, kv_buffers=2) <= budget)
    Lq_pad = _round_up(Lq, TQ)
    grid = (B, Lq_pad // TQ)

    inputs = [q, k, v]
    if has_mask:
        # 1 byte/element into the kernel; no bf16 bias materialization pass.
        inputs.append(jnp.broadcast_to(mask, (B, Lq, Lk)).astype(jnp.int8))

    if Lq_pad != Lq:
        pad = Lq_pad - Lq
        inputs[0] = jnp.pad(q, ((0, 0), (0, pad), (0, 0)))
        if has_mask:
            inputs[3] = jnp.pad(inputs[3], ((0, 0), (0, pad), (0, 0)))

    inv_temperature = 1.0 / float(temperature)
    kernel = functools.partial(_sdpa_kernel, inv_temperature=inv_temperature,
                               has_mask=has_mask, return_attn=return_attn)

    vmem_limit = step_bytes(TQ, kv_buffers=2) + (4 << 20)
    vmem_limit = int(min(max(vmem_limit, 16 << 20), int(0.85 * capacity)))

    def build(single_buffer_kv):
        # K/V index_maps are constant over the query-tile axis: single-buffer
        # them to free VMEM for larger query tiles (most valuable on v7x).
        kv_kwargs = {"pipeline_mode": pl.Buffered(1)} if single_buffer_kv else {}
        in_specs = [
            pl.BlockSpec((1, TQ, D), lambda b, i: (b, i, 0)),
            pl.BlockSpec((1, Lk, D), lambda b, i: (b, 0, 0), **kv_kwargs),
            pl.BlockSpec((1, Lk, Dv), lambda b, i: (b, 0, 0), **kv_kwargs),
        ]
        if has_mask:
            in_specs.append(pl.BlockSpec((1, TQ, Lk), lambda b, i: (b, i, 0)))
        out_specs = [pl.BlockSpec((1, TQ, Dv), lambda b, i: (b, i, 0))]
        out_shape = [jax.ShapeDtypeStruct((B, Lq_pad, Dv), out_dt)]
        if return_attn:
            out_specs.append(pl.BlockSpec((1, TQ, Lk), lambda b, i: (b, i, 0)))
            out_shape.append(jax.ShapeDtypeStruct((B, Lq_pad, Lk), attn_dt))
        return pl.pallas_call(
            kernel,
            out_shape=out_shape,
            grid_spec=pltpu.PrefetchScalarGridSpec(
                num_scalar_prefetch=0,
                grid=grid,
                in_specs=in_specs,
                out_specs=out_specs,
            ),
            compiler_params=pltpu.CompilerParams(
                dimension_semantics=("parallel", "parallel"),
                vmem_limit_bytes=vmem_limit,
            ),
        )

    try:
        results = build(single_buffer_kv=True)(*inputs)
    except Exception:
        # pipeline_mode=pl.Buffered(1) not supported on this build: default buffering.
        results = build(single_buffer_kv=False)(*inputs)

    if not isinstance(results, (tuple, list)):
        results = (results,)
    out = results[0]
    attn = results[1] if return_attn else None

    if Lq_pad != Lq:
        out = out[:, :Lq]
        if attn is not None:
            attn = attn[:, :Lq]
    return out, attn


def _reference(q, k, v, temperature, mask=None):
    s = jnp.einsum("bqd,bkd->bqk", q, k) / temperature
    if mask is not None:
        s = jnp.where(mask, -jnp.inf, s)
    p = jax.nn.softmax(s, axis=2)
    return jnp.einsum("bqk,bkd->bqd", p, v), p


def _check(name, q, k, v, temperature, mask, return_attn=True):
    out, attn = scaled_dot_product_attention(
        q, k, v, temperature, mask=mask, return_attn=return_attn)
    out = jax.block_until_ready(out)
    ref_out, ref_attn = _reference(q, k, v, temperature, mask=mask)
    assert out.shape == ref_out.shape, name
    # Tolerance accounts for the EUP approximate reciprocal in the softmax.
    assert jnp.allclose(out, ref_out, atol=2e-3, rtol=2e-3), name
    if return_attn:
        attn = jax.block_until_ready(attn)
        assert jnp.allclose(attn, ref_attn, atol=2e-3, rtol=2e-3), name


if __name__ == "__main__":
    # Small shapes consistent with the module: q/k: [B, L, D], v: [B, L, Dv].
    B, Lq, Lk, D, Dv = 2, 8, 8, 32, 32
    temperature = float(D) ** 0.5
    kq, kk, kv, km = jax.random.split(jax.random.PRNGKey(0), 4)
    q = jax.random.normal(kq, (B, Lq, D), dtype=jnp.float32)
    k = jax.random.normal(kk, (B, Lk, D), dtype=jnp.float32)
    v = jax.random.normal(kv, (B, Lk, Dv), dtype=jnp.float32)
    # Boolean mask (True = masked out), sparse so no row is fully masked.
    mask = jax.random.uniform(km, (B, Lq, Lk)) < 0.2
    _check("small+mask", q, k, v, temperature, mask)
    _check("small+nomask", q, k, v, temperature, None)
    _check("small+mask+noattn", q, k, v, temperature, mask, return_attn=False)

    # Exercises the query tiling (grid = (2, 2)) and the in-kernel int8 mask.
    B2, Lq2, Lk2, D2, Dv2 = 2, 1024, 256, 64, 64
    temperature2 = float(D2) ** 0.5
    kq2, kk2, kv2, km2 = jax.random.split(jax.random.PRNGKey(1), 4)
    q2 = jax.random.normal(kq2, (B2, Lq2, D2), dtype=jnp.float32)
    k2 = jax.random.normal(kk2, (B2, Lk2, D2), dtype=jnp.float32)
    v2 = jax.random.normal(kv2, (B2, Lk2, Dv2), dtype=jnp.float32)
    mask2 = jax.random.uniform(km2, (B2, Lq2, Lk2)) < 0.2
    _check("tiled+mask", q2, k2, v2, temperature2, mask2)

    # Awkward Lq: exercises the wrapper-side padding path (no full-Lq fallback).
    B3, Lq3, Lk3, D3, Dv3 = 1, 600, 128, 32, 32
    temperature3 = float(D3) ** 0.5
    kq3, kk3, kv3, km3 = jax.random.split(jax.random.PRNGKey(2), 4)
    q3 = jax.random.normal(kq3, (B3, Lq3, D3), dtype=jnp.float32)
    k3 = jax.random.normal(kk3, (B3, Lk3, D3), dtype=jnp.float32)
    v3 = jax.random.normal(kv3, (B3, Lk3, Dv3), dtype=jnp.float32)
    mask3 = jax.random.uniform(km3, (B3, Lq3, Lk3)) < 0.2
    _check("padded+mask", q3, k3, v3, temperature3, mask3)

    print("KERNEL_OK")
</pallas_src>

<mosaic_0001>
module attributes {stable_mosaic.version = 11 : i64} {
  func.func @_sdpa_kernel(%arg0: i32, %arg1: i32, %arg2: memref<1x8x32xf32, #tpu.memory_space<vmem>>, %arg3: memref<1x8x32xf32, #tpu.memory_space<vmem>>, %arg4: memref<1x8x32xf32, #tpu.memory_space<vmem>>, %arg5: memref<1x8x8xi8, #tpu.memory_space<vmem>>, %arg6: memref<1x8x32xf32, #tpu.memory_space<vmem>>, %arg7: memref<1x8x8xf32, #tpu.memory_space<vmem>>) attributes {dimension_semantics = [#tpu.dimension_semantics<parallel>, #tpu.dimension_semantics<parallel>], iteration_bounds = array<i64: 2, 1>, scalar_prefetch = 0 : i64, scratch_operands = 0 : i64, tpu.core_type = #tpu.core_type<tc>, window_params = [{transform_indices = @transform_0, window_bounds = array<i64: 1, 8, 32>}, {pipeline_mode = #tpu.pipeline_mode<synchronous>, transform_indices = @transform_1, window_bounds = array<i64: 1, 8, 32>}, {pipeline_mode = #tpu.pipeline_mode<synchronous>, transform_indices = @transform_2, window_bounds = array<i64: 1, 8, 32>}, {transform_indices = @transform_3, window_bounds = array<i64: 1, 8, 8>}, {transform_indices = @transform_4, window_bounds = array<i64: 1, 8, 32>}, {transform_indices = @transform_5, window_bounds = array<i64: 1, 8, 8>}]} {
    %c0 = arith.constant 0 : index
    %c0_0 = arith.constant 0 : index
    %c0_1 = arith.constant 0 : index
    %0 = vector.load %arg2[%c0, %c0_0, %c0_1] : memref<1x8x32xf32, #tpu.memory_space<vmem>>, vector<1x8x32xf32>
    %1 = vector.shape_cast %0 : vector<1x8x32xf32> to vector<8x32xf32>
    %cst = arith.constant 0.176776692 : f32
    %2 = vector.broadcast %cst : f32 to vector<8x32xf32>
    %3 = arith.mulf %1, %2 : vector<8x32xf32>
    %c0_2 = arith.constant 0 : index
    %c0_3 = arith.constant 0 : index
    %c0_4 = arith.constant 0 : index
    %4 = vector.load %arg3[%c0_2, %c0_3, %c0_4] : memref<1x8x32xf32, #tpu.memory_space<vmem>>, vector<1x8x32xf32>
    %5 = vector.shape_cast %4 : vector<1x8x32xf32> to vector<8x32xf32>
    %c0_5 = arith.constant 0 : index
    %c0_6 = arith.constant 0 : index
    %c0_7 = arith.constant 0 : index
    %6 = vector.load %arg4[%c0_5, %c0_6, %c0_7] : memref<1x8x32xf32, #tpu.memory_space<vmem>>, vector<1x8x32xf32>
    %7 = vector.shape_cast %6 : vector<1x8x32xf32> to vector<8x32xf32>
    %cst_8 = arith.constant dense<0.000000e+00> : vector<8x8xf32>
    %8 = tpu.matmul %3, %5, %cst_8 {dimension_numbers = #tpu.dot_dimension_numbers<[1], [1], [0], [0], [0, 0, 1, 0], [], []>} : vector<8x32xf32>, vector<8x32xf32>, vector<8x8xf32> -> vector<8x8xf32>
    %c0_9 = arith.constant 0 : index
    %c0_10 = arith.constant 0 : index
    %c0_11 = arith.constant 0 : index
    %9 = vector.load %arg5[%c0_9, %c0_10, %c0_11] : memref<1x8x8xi8, #tpu.memory_space<vmem>>, vector<1x8x8xi8>
    %10 = vector.shape_cast %9 : vector<1x8x8xi8> to vector<8x8xi8>
    %c0_i8 = arith.constant 0 : i8
    %11 = vector.broadcast %c0_i8 : i8 to vector<8x8xi8>
    %12 = arith.cmpi ne, %10, %11 : vector<8x8xi8>
    %cst_12 = arith.constant -1.000000e+30 : f32
    %13 = vector.broadcast %cst_12 : f32 to vector<8x8xf32>
    %14 = arith.select %12, %13, %8 : vector<8x8xi1>, vector<8x8xf32>
    %cst_13 = arith.constant dense<0xFF800000> : vector<8xf32>
    %15 = vector.multi_reduction <maximumf>, %14, %cst_13 [1] : vector<8x8xf32> to vector<8xf32>
    %16 = vector.shape_cast %15 : vector<8xf32> to vector<8x1xf32>
    %17 = vector.broadcast %16 : vector<8x1xf32> to vector<8x8xf32>
    %18 = arith.subf %14, %17 : vector<8x8xf32>
    %19 = math.exp %18 : vector<8x8xf32>
    %cst_14 = arith.constant dense<0.000000e+00> : vector<8xf32>
    %20 = vector.multi_reduction <add>, %19, %cst_14 [1] : vector<8x8xf32> to vector<8xf32>
    %21 = vector.shape_cast %20 : vector<8xf32> to vector<8x1xf32>
    %22 = tpu.reciprocal %21 {approx = true} : vector<8x1xf32> -> vector<8x1xf32>
    %23 = vector.broadcast %22 : vector<8x1xf32> to vector<8x8xf32>
    %24 = arith.mulf %19, %23 : vector<8x8xf32>
    %c0_15 = arith.constant 0 : index
    %c0_16 = arith.constant 0 : index
    %c0_17 = arith.constant 0 : index
    %25 = vector.load %arg7[%c0_15, %c0_16, %c0_17] : memref<1x8x8xf32, #tpu.memory_space<vmem>>, vector<1x8x8xf32>
    %26 = vector.shape_cast %25 : vector<1x8x8xf32> to vector<8x8xf32>
    %27 = vector.shape_cast %24 : vector<8x8xf32> to vector<1x8x8xf32>
    tpu.vector_store %arg7[%c0_15, %c0_16, %c0_17], %27 {strides = array<i32>} : memref<1x8x8xf32, #tpu.memory_space<vmem>>, vector<1x8x8xf32>,
    %cst_18 = arith.constant dense<0.000000e+00> : vector<8x32xf32>
    %28 = tpu.matmul %24, %7, %cst_18 {dimension_numbers = #tpu.dot_dimension_numbers<[1], [0], [0], [1], [0, 0, 1, 1], [], []>} : vector<8x8xf32>, vector<8x32xf32>, vector<8x32xf32> -> vector<8x32xf32>
    %c0_19 = arith.constant 0 : index
    %c0_20 = arith.constant 0 : index
    %c0_21 = arith.constant 0 : index
    %29 = vector.load %arg6[%c0_19, %c0_20, %c0_21] : memref<1x8x32xf32, #tpu.memory_space<vmem>>, vector<1x8x32xf32>
    %30 = vector.shape_cast %29 : vector<1x8x32xf32> to vector<8x32xf32>
    %31 = vector.shape_cast %28 : vector<8x32xf32> to vector<1x8x32xf32>
    tpu.vector_store %arg6[%c0_19, %c0_20, %c0_21], %31 {strides = array<i32>} : memref<1x8x32xf32, #tpu.memory_space<vmem>>, vector<1x8x32xf32>,
    return
  }
  func.func @transform_0(%arg0: i32, %arg1: i32) -> (i32, i32, i32) {
    %c0_i32 = arith.constant 0 : i32
    %c0_i32_0 = arith.constant 0 : i32
    return %arg0, %arg1, %c0_i32 : i32, i32, i32
  }
  func.func @transform_1(%arg0: i32, %arg1: i32) -> (i32, i32, i32) {
    %c0_i32 = arith.constant 0 : i32
    %c0_i32_0 = arith.constant 0 : i32
    %c0_i32_1 = arith.constant 0 : i32
    return %arg0, %c0_i32, %c0_i32_0 : i32, i32, i32
  }
  func.func @transform_2(%arg0: i32, %arg1: i32) -> (i32, i32, i32) {
    %c0_i32 = arith.constant 0 : i32
    %c0_i32_0 = arith.constant 0 : i32
    %c0_i32_1 = arith.constant 0 : i32
    return %arg0, %c0_i32, %c0_i32_0 : i32, i32, i32
  }
  func.func @transform_3(%arg0: i32, %arg1: i32) -> (i32, i32, i32) {
    %c0_i32 = arith.constant 0 : i32
    %c0_i32_0 = arith.constant 0 : i32
    return %arg0, %arg1, %c0_i32 : i32, i32, i32
  }
  func.func @transform_4(%arg0: i32, %arg1: i32) -> (i32, i32, i32) {
    %c0_i32 = arith.constant 0 : i32
    %c0_i32_0 = arith.constant 0 : i32
    return %arg0, %arg1, %c0_i32 : i32, i32, i32
  }
  func.func @transform_5(%arg0: i32, %arg1: i32) -> (i32, i32, i32) {
    %c0_i32 = arith.constant 0 : i32
    %c0_i32_0 = arith.constant 0 : i32
    return %arg0, %arg1, %c0_i32 : i32, i32, i32
  }
}

module attributes {stable_mosaic.version = 11 : i64} {
  func.func @_sdpa_kernel(%arg0: i32, %arg1: i32, %arg2: memref<1x8x32xf32, #tpu.memory_space<vmem>>, %arg3: memref<1x8x32xf32, #tpu.memory_space<vmem>>, %arg4: memref<1x8x32xf32, #tpu.memory_space<vmem>>, %arg5: memref<1x8x8xi8, #tpu.memory_space<vmem>>, %arg6: memref<1x8x32xf32, #tpu.memory_space<vmem>>, %arg7: memref<1x8x8xf32, #tpu.memory_space<vmem>>) attributes {dimension_semantics = [#tpu.dimension_semantics<parallel>, #tpu.dimension_semantics<parallel>], iteration_bounds = array<i64: 2, 1>, scalar_prefetch = 0 : i64, scratch_operands = 0 : i64, tpu.core_type = #tpu.core_type<tc>, window_params = [{transform_indices = @transform_0, window_bounds = array<i64: 1, 8, 32>}, {transform_indices = @transform_1, window_bounds = array<i64: 1, 8, 32>}, {transform_indices = @transform_2, window_bounds = array<i64: 1, 8, 32>}, {transform_indices = @transform_3, window_bounds = array<i64: 1, 8, 8>}, {transform_indices = @transform_4, window_bounds = array<i64: 1, 8, 32>}, {transform_indices = @transform_5, window_bounds = array<i64: 1, 8, 8>}]} {
    %c0 = arith.constant 0 : index
    %c0_0 = arith.constant 0 : index
    %c0_1 = arith.constant 0 : index
    %0 = vector.load %arg2[%c0, %c0_0, %c0_1] : memref<1x8x32xf32, #tpu.memory_space<vmem>>, vector<1x8x32xf32>
    %1 = vector.shape_cast %0 : vector<1x8x32xf32> to vector<8x32xf32>
    %cst = arith.constant 0.176776692 : f32
    %2 = vector.broadcast %cst : f32 to vector<8x32xf32>
    %3 = arith.mulf %1, %2 : vector<8x32xf32>
    %c0_2 = arith.constant 0 : index
    %c0_3 = arith.constant 0 : index
    %c0_4 = arith.constant 0 : index
    %4 = vector.load %arg3[%c0_2, %c0_3, %c0_4] : memref<1x8x32xf32, #tpu.memory_space<vmem>>, vector<1x8x32xf32>
    %5 = vector.shape_cast %4 : vector<1x8x32xf32> to vector<8x32xf32>
    %c0_5 = arith.constant 0 : index
    %c0_6 = arith.constant 0 : index
    %c0_7 = arith.constant 0 : index
    %6 = vector.load %arg4[%c0_5, %c0_6, %c0_7] : memref<1x8x32xf32, #tpu.memory_space<vmem>>, vector<1x8x32xf32>
    %7 = vector.shape_cast %6 : vector<1x8x32xf32> to vector<8x32xf32>
    %cst_8 = arith.constant dense<0.000000e+00> : vector<8x8xf32>
    %8 = tpu.matmul %3, %5, %cst_8 {dimension_numbers = #tpu.dot_dimension_numbers<[1], [1], [0], [0], [0, 0, 1, 0], [], []>} : vector<8x32xf32>, vector<8x32xf32>, vector<8x8xf32> -> vector<8x8xf32>
    %c0_9 = arith.constant 0 : index
    %c0_10 = arith.constant 0 : index
    %c0_11 = arith.constant 0 : index
    %9 = vector.load %arg5[%c0_9, %c0_10, %c0_11] : memref<1x8x8xi8, #tpu.memory_space<vmem>>, vector<1x8x8xi8>
    %10 = vector.shape_cast %9 : vector<1x8x8xi8> to vector<8x8xi8>
    %c0_i8 = arith.constant 0 : i8
    %11 = vector.broadcast %c0_i8 : i8 to vector<8x8xi8>
    %12 = arith.cmpi ne, %10, %11 : vector<8x8xi8>
    %cst_12 = arith.constant -1.000000e+30 : f32
    %13 = vector.broadcast %cst_12 : f32 to vector<8x8xf32>
    %14 = arith.select %12, %13, %8 : vector<8x8xi1>, vector<8x8xf32>
    %cst_13 = arith.constant dense<0xFF800000> : vector<8xf32>
    %15 = vector.multi_reduction <maximumf>, %14, %cst_13 [1] : vector<8x8xf32> to vector<8xf32>
    %16 = vector.shape_cast %15 : vector<8xf32> to vector<8x1xf32>
    %17 = vector.broadcast %16 : vector<8x1xf32> to vector<8x8xf32>
    %18 = arith.subf %14, %17 : vector<8x8xf32>
    %19 = math.exp %18 : vector<8x8xf32>
    %cst_14 = arith.constant dense<0.000000e+00> : vector<8xf32>
    %20 = vector.multi_reduction <add>, %19, %cst_14 [1] : vector<8x8xf32> to vector<8xf32>
    %21 = vector.shape_cast %20 : vector<8xf32> to vector<8x1xf32>
    %22 = tpu.reciprocal %21 {approx = true} : vector<8x1xf32> -> vector<8x1xf32>
    %23 = vector.broadcast %22 : vector<8x1xf32> to vector<8x8xf32>
    %24 = arith.mulf %19, %23 : vector<8x8xf32>
    %c0_15 = arith.constant 0 : index
    %c0_16 = arith.constant 0 : index
    %c0_17 = arith.constant 0 : index
    %25 = vector.load %arg7[%c0_15, %c0_16, %c0_17] : memref<1x8x8xf32, #tpu.memory_space<vmem>>, vector<1x8x8xf32>
    %26 = vector.shape_cast %25 : vector<1x8x8xf32> to vector<8x8xf32>
    %27 = vector.shape_cast %24 : vector<8x8xf32> to vector<1x8x8xf32>
    tpu.vector_store %arg7[%c0_15, %c0_16, %c0_17], %27 {strides = array<i32>} : memref<1x8x8xf32, #tpu.memory_space<vmem>>, vector<1x8x8xf32>,
    %cst_18 = arith.constant dense<0.000000e+00> : vector<8x32xf32>
    %28 = tpu.matmul %24, %7, %cst_18 {dimension_numbers = #tpu.dot_dimension_numbers<[1], [0], [0], [1], [0, 0, 1, 1], [], []>} : vector<8x8xf32>, vector<8x32xf32>, vector<8x32xf32> -> vector<8x32xf32>
    %c0_19 = arith.constant 0 : index
    %c0_20 = arith.constant 0 : index
    %c0_21 = arith.constant 0 : index
    %29 = vector.load %arg6[%c0_19, %c0_20, %c0_21] : memref<1x8x32xf32, #tpu.memory_space<vmem>>, vector<1x8x32xf32>
    %30 = vector.shape_cast %29 : vector<1x8x32xf32> to vector<8x32xf32>
    %31 = vector.shape_cast %28 : vector<8x32xf32> to vector<1x8x32xf32>
    tpu.vector_store %arg6[%c0_19, %c0_20, %c0_21], %31 {strides = array<i32>} : memref<1x8x32xf32, #tpu.memory_space<vmem>>, vector<1x8x32xf32>,
    return
  }
  func.func @transform_0(%arg0: i32, %arg1: i32) -> (i32, i32, i32) {
    %c0_i32 = arith.constant 0 : i32
    %c0_i32_0 = arith.constant 0 : i32
    return %arg0, %arg1, %c0_i32 : i32, i32, i32
  }
  func.func @transform_1(%arg0: i32, %arg1: i32) -> (i32, i32, i32) {
    %c0_i32 = arith.constant 0 : i32
    %c0_i32_0 = arith.constant 0 : i32
    %c0_i32_1 = arith.constant 0 : i32
    return %arg0, %c0_i32, %c0_i32_0 : i32, i32, i32
  }
  func.func @transform_2(%arg0: i32, %arg1: i32) -> (i32, i32, i32) {
    %c0_i32 = arith.constant 0 : i32
    %c0_i32_0 = arith.constant 0 : i32
    %c0_i32_1 = arith.constant 0 : i32
    return %arg0, %c0_i32, %c0_i32_0 : i32, i32, i32
  }
  func.func @transform_3(%arg0: i32, %arg1: i32) -> (i32, i32, i32) {
    %c0_i32 = arith.constant 0 : i32
    %c0_i32_0 = arith.constant 0 : i32
    return %arg0, %arg1, %c0_i32 : i32, i32, i32
  }
  func.func @transform_4(%arg0: i32, %arg1: i32) -> (i32, i32, i32) {
    %c0_i32 = arith.constant 0 : i32
    %c0_i32_0 = arith.constant 0 : i32
    return %arg0, %arg1, %c0_i32 : i32, i32, i32
  }
  func.func @transform_5(%arg0: i32, %arg1: i32) -> (i32, i32, i32) {
    %c0_i32 = arith.constant 0 : i32
    %c0_i32_0 = arith.constant 0 : i32
    return %arg0, %arg1, %c0_i32 : i32, i32, i32
  }
}

</mosaic_0001>

<bundles_post_ra>
// kernel: tpu_custom_call.1
= control target key start
LH: loop header
LB: loop body
LE: loop exit
PB: predicated region body
PF: predicated region fallthrough
CT: control target
= control target key end

     0   :  { %s1315_s0 = inlined_call_operand.hbm [shape: f32[2,8,32], index: 0, kind: input, shape index: {}]   ;;  %s1316_s1 = inlined_call_operand.hbm [shape: f32[2,8,32], index: 1, kind: input, shape index: {}]   ;;  %s1317_s2 = inlined_call_operand.hbm [shape: f32[2,8,32], index: 2, kind: input, shape index: {}]   ;;  %s1318_s3 = inlined_call_operand.vmem [shape: s8[2,8,8], index: 3, kind: input, shape index: {}]   ;;  %s1319_s4 = inlined_call_operand.hbm [shape: f32[2,8,32], index: 4, kind: output, shape index: {0}]   ;;  %s1320_s5 = inlined_call_operand.hbm [shape: f32[2,8,8], index: 5, kind: output, shape index: {1}]  }
   0x1   :  { %1324 = sst [smem:[#allocation15_spill]] %s1316_s1 }
   0x2   :  { %11 = vsyncpa [#allocation3], 0 }
   0x3   :  { %13 = vsyncpa [#allocation3 + $0x1], 0 }
   0x4   :  { %14 = vsyncpa [#allocation6], 0 }
   0x5   :  { %15 = vsyncpa [#allocation4], 0 }
   0x6   :  { %17 = vsyncpa [#allocation4 + $0x1], 0 }
   0x7   :  { %18 = vsyncpa [#allocation10], 0 }
   0x8   :  { %20 = vsyncpa [#allocation10 + $0x1], 0  ;;  %s1059_s18 = smov 0   ;;  %s1061_s19 = smov 0  }
   0x9   :  { %s1063_s20 = smov 0   ;;  %s1065_s21 = smov 0  }
   0xa   :  { %s1067_s22 = smov 0   ;;  %s1069_s23 = smov 0  }
   0xb LB: > { %s698_s24 = sadd.s32 4294967295, %s1019_s23   ;;  %s699_s25 = sadd.s32 4294967294, %s1019_s23   ;;  %s1019_s23 = sphi %s1069_s23, %s26_s23   ;;  %s1015_s22 = sphi %s1067_s22, %s1342_s22   ;;  %s1011_s21 = sphi %s1065_s21, %s1341_s21   ;;  %s1007_s20 = sphi %s1063_s20, %s1340_s20   ;;  %s1003_s19 = sphi %s1061_s19, %s1339_s19   ;;  %s999_s18 = sphi %s1059_s18, %s1338_s18  }
   0xc   : > { %p60_p0 = scmp.ne.s32.totalorder %s1003_s19, %s999_s18  ;;  %p61_p1 = scmp.eq.s32.totalorder %s698_s24, 0 }
   0xd   : > { %p1093_p2 = scmp.eq.s32.totalorder %s698_s24, 1  ;;  %p172_p3 = scmp.eq.s32.totalorder %s699_s25, 1 }
   0xe   : > { %p1097_p4 = por %p61_p1, %p60_p0  ;;  %p700_p5 = scmp.ge.s32.totalorder %s1019_s23, 1 }
   0xf   : > { %s1325_s26 = scalar_select %p1093_p2, 1, 0 }
  0x10   : > { %s1326_s27 = scalar_select %p1097_p4, 1, 0 }
  0x11   : > { %p1102_p6 = por %p172_p3, %p60_p0  ;;  %p207_p7 = scmp.lt.s32.totalorder %s1019_s23, 3 }
  0x12   : > { %s1108_s29 = sshll.u32 %s1011_s21, 7  ;;  %s1329_s1 = sld [smem:[#allocation15_spill]] }
  0x13   : > { %s1327_s28 = scalar_select %p1102_p6, 1, 0 }
  0x14   : > { %p1110_p8 = pnand %p700_p5, %p207_p7  ;;  %s1021_s9 = smov [#allocation5]  }
  0x15   : > { %s222_s10 = sshll.u32 %s1021_s9, 4  ;;  %s1127_s13 = scalar_lea.hbm %s1317_s2, %s1108_s29  ;;  %s223_s10 = int_to_ptr.vmem [resolvable:$true] %s222_s10 }
  0x16   : > { %s1328_s30 = scalar_select %p1110_p8, 1, 0 }
  0x17   : > { %p744_p10 = pneg %p1110_p8  ;;  %s1022_s15 = smov [#allocation7]  }
  0x18   : > { %s1118_s8 = scalar_lea.hbm %s1329_s1, %s1108_s29  ;;  %s235_s16 = sshll.u32 %s1022_s15, 4  ;;  %s1135_s16 = int_to_ptr.vmem [resolvable:$true] %s235_s16 }
  0x19   : > { %p1131_p11 = pnand %p744_p10, %p1097_p4  ;;  %s821_s17 = scalar_lea.hbm %s1118_s8, 128 }
  0x1a   : > { %p822_p12 = scmp.ne.s32.totalorder %s1118_s8, %s821_s17  ;;  %s826_s6 = scalar_lea.hbm %s1329_s1, 256 }
  0x1b   : > { %p823_p13 = pneg %p1131_p11  ;;  %p827_p3 = scmp.lt.s32.totalorder %s1118_s8, %s1329_s1 }
  0x1c   : > { %p828_p5 = scmp.lt.s32.totalorder %s826_s6, %s821_s17 }
  0x1d   : > { %p824_p0 = pnand %p823_p13, %p822_p12 }
  0x1e   : > { %p829_p7 = por %p828_p5, %p827_p3 }
  0x1f   : > { %p825_p1 = pneg %p824_p0 }
  0x21   : > { %p830_p10 = pnand %p829_p7, %p825_p1 }
  0x23   : > { %833 = shalt.err (!%p830_p10)
}
  0x24   : > { %s834_s11 = scalar_lea.vmem %s223_s10, 128  ;;  %p842_p0 = scmp.lt.s32.totalorder %s223_s10, %s223_s10 }
  0x25   : > { %p835_p9 = scmp.ne.s32.totalorder %s223_s10, %s834_s11  ;;  %p843_p4 = scmp.lt.s32.totalorder %s834_s11, %s834_s11 }
  0x27   : > { %p837_p6 = pnand %p835_p9, %p823_p13  ;;  %p844_p8 = por %p843_p4, %p842_p0 }
  0x29   : > { %p838_p12 = pneg %p837_p6 }
  0x2b   : > { %p845_p2 = pnand %p844_p8, %p838_p12 }
  0x2d   : > { %848 = shalt.err (!%p845_p2)
}
  0x2e   : > { %747 = dma.hbm_to_vmem [thread:$0]  (!%p1131_p11), %s1118_s8, 128, %s223_s10, [#allocation6]  }
  0x2f   : > { %s849_s12 = scalar_lea.hbm %s1127_s13, 128  ;;  %s854_s24 = scalar_lea.hbm %s1317_s2, 256 }
  0x30   : > { %p850_p1 = scmp.ne.s32.totalorder %s1127_s13, %s849_s12  ;;  %p855_p2 = scmp.lt.s32.totalorder %s1127_s13, %s1317_s2 }
  0x31   : > { %p856_p4 = scmp.lt.s32.totalorder %s854_s24, %s849_s12 }
  0x32   : > { %p852_p3 = pnand %p850_p1, %p823_p13 }
  0x33   : > { %p857_p6 = por %p856_p4, %p855_p2 }
  0x34   : > { %p853_p9 = pneg %p852_p3 }
  0x36   : > { %p858_p8 = pnand %p857_p6, %p853_p9 }
  0x38   : > { %861 = shalt.err (!%p858_p8)
}
  0x39   : > { %s862_s8 = scalar_lea.vmem %s1135_s16, 128  ;;  %p870_p12 = scmp.lt.s32.totalorder %s1135_s16, %s1135_s16 }
  0x3a   : > { %p863_p5 = scmp.ne.s32.totalorder %s1135_s16, %s862_s8  ;;  %p871_p0 = scmp.lt.s32.totalorder %s862_s8, %s862_s8 }
  0x3c   : > { %p865_p7 = pnand %p863_p5, %p823_p13  ;;  %p872_p1 = por %p871_p0, %p870_p12 }
  0x3e   : > { %p866_p10 = pneg %p865_p7 }
  0x40   : > { %p873_p3 = pnand %p872_p1, %p866_p10 }
  0x42   : > { %876 = shalt.err (!%p873_p3)
}
  0x43   : > { %750 = dma.hbm_to_vmem [thread:$0]  (!%p1131_p11), %s1127_s13, 128, %s1135_s16, [#allocation6]  }
  0x44   : > { %s38_s10 = sadd.s32 1, %s1015_s22  ;;  %s47_s7 = sadd.s32 1, %s1007_s20 }
  0x45   : > { %p40_p13 = scmp.ge.s32.totalorder %s38_s10, 2  ;;  %p54_p9 = scmp.ne.s32.totalorder %s1007_s20, %s1003_s19 }
  0x46   : > { %p55_p2 = scmp.eq.s32.totalorder %s1019_s23, 0  ;;  %p762_p4 = scmp.lt.s32.totalorder %s1019_s23, 2 }
  0x47   : > { %s1344_s10 = smov (%p40_p13, %s38_s10), 0  ;;  %p1331_p8 = scmp.ne.s32.totalorder %s1325_s26, 0 }
  0x48   : > { %p56_p6 = por %p55_p2, %p54_p9  ;;  %s42_s9 = ssub.s32 %s1015_s22, %s1344_s10 }
  0x49   : > { %p1190_p5 = por %p1331_p8, %p54_p9  ;;  %s246_s11 = sand.u32 1, %s1007_s20  }
  0x4a   : > { %p45_p7 = scmp.eq.s32.totalorder %s42_s9, 0  ;;  %s704_s13 = sshll.u32 %s246_s11, 3 }
  0x4b   : > { %s705_s16 = sshll.u32 %s1015_s22, 7  ;;  %s250_s25 = scalar_lea.vmem [#allocation2], %s704_s13 }
  0x4c   : > { %s1199_s12 = scalar_select %p45_p7, %s1007_s20, %s47_s7  }
  0x4d   : > { %s256_s24 = scalar_lea.hbm %s1315_s0, %s705_s16  ;;  %s258_s6 = sshll.u32 %s250_s25, 4  ;;  %s259_s6 = int_to_ptr.vmem [resolvable:$true] %s258_s6 }
  0x4e   : > { %p1206_p11 = pnand %p762_p4, %p56_p6  ;;  %s247_s8 = scalar_lea.sflag [#allocation3], %s246_s11 }
  0x4f   : > { %s890_s9 = scalar_lea.vmem %s259_s6, 128  ;;  %s1023_s7 = smov [#allocation2]  }
  0x50   : > { %p879_p10 = pneg %p1206_p11  ;;  %p891_p12 = scmp.ne.s32.totalorder %s259_s6, %s890_s9 }
  0x51   : > { %s895_s1 = sshll.u32 %s1023_s7, 4  ;;  %s896_s1 = int_to_ptr.vmem [resolvable:$false] %s895_s1 }
  0x52   : > { %p893_p0 = pnand %p891_p12, %p879_p10  ;;  %s897_s16 = scalar_lea.vmem %s896_s1, 256 }
  0x53   : > { %p898_p3 = scmp.lt.s32.totalorder %s259_s6, %s896_s1  ;;  %p899_p13 = scmp.lt.s32.totalorder %s897_s16, %s890_s9 }
  0x54   : > { %p894_p1 = pneg %p893_p0 }
  0x55   : > { %p900_p9 = por %p899_p13, %p898_p3 }
  0x57   : > { %p901_p2 = pnand %p900_p9, %p894_p1 }
  0x59   : > { %904 = shalt.err (!%p901_p2)
}
  0x5a   : > { %754 = dma.hbm_to_vmem [thread:$0]  (!%p1206_p11), %s256_s24, 128, %s259_s6, %s247_s8  }
  0x5b   : > { %p1334_p4 = scmp.ne.s32.totalorder %s1328_s30, 0 }
  0x5c   : > { %s1217_s11 = sand.u32 (!%p1334_p4), 1, %s1003_s19   ;;  %p1335_p6 = scmp.ne.s32.totalorder (!%p1334_p4), %s1326_s27, 0 }
  0x5d   : > { %277 = sbr.rel (%p1334_p4) target bundleno = 820 (0x334), region = 36  ;;  %s1220_s13 = sshll.u32 (!%p1334_p4), %s1217_s11, 3 }
  0x5e   : > { %s280_s1 = scalar_lea.sflag (!%p1334_p4), [#allocation3], %s1217_s11  ;;  %s283_s15 = scalar_lea.vmem (!%p1334_p4), [#allocation2], %s1220_s13 }
  0x62   : > { %982 = dma.done.wait (%p1335_p6), %s280_s1, 128  }
  0x63   : > { %984 = vsyncadd (%p1335_p6), %s280_s1, 4294967168 }
  0x64   : > { %986 = dma.done.wait (%p1335_p6), [#allocation6], 256  }
  0x65   : > { %988 = vsyncadd (%p1335_p6), [#allocation6], 4294967040  ;;  %v1024_v0 = vmov 0.0   ;;  %vm1025_vm0 = vmmov 0   ;;  %vm343_vm1 = vcmask 261120   ;;  %v341_v1 = vld [vmem:[#allocation5] sm:$0xff]  ;;  %s545_s8 = scalar_lea.hbm %s1320_s5, %s1108_s29 }
  0x66   : > { %724 = vmatprep.subr.mxu0 %v1024_v0  ;;  %726 = vmatprep.mubr.msk.f32.mxu0 %vm1025_vm0, %v1024_v0  ;;  %v339_v2 = vld [vmem:[%s283_s15] sm:$0xff]  ;;  %p330_p8 = scmp.lt.s32.totalorder %s1011_s21, 1  ;;  %v1026_v5 = vmov 0   ;;  %vm426_vm4 = vcmask 64512   ;;  %v342_v17 = vld [vmem:[#allocation7] sm:$0xff]  ;;  %s519_s9 = scalar_lea.sflag [#allocation10], %s1217_s11 }
  0x67   : > { %729 = vmatprep.subr.mxu1 %v1024_v0  ;;  %731 = vmatprep.mubr.msk.f32.mxu1 %vm1025_vm0, %v1024_v0  ;;  %v340_v3 = vmul.f32 0.17677669, %v339_v2  ;;  %s1027_s16 = smov [#allocation9]  }
  0x68   : > { %725 = vmatpush3.xpose.msk.msra.mxu0 %vm343_vm1, %v341_v1  ;;  %s1346_s21 = smov (!%p330_p8, %s1011_s21), 1  ;;  %730 = vmatpush3.msra.mxu1 %v342_v17  ;;  %s909_s1 = sshll.u32 %s1027_s16, 4  ;;  %s910_s1 = int_to_ptr.vmem [resolvable:$false] %s909_s1 }
  0x69   : > { %s710_s27 = sshll.u32 %s1346_s21, 1  ;;  %s329_s21 = scalar_lea.vmem [#allocation9], %s1220_s13 }
  0x6a   : > { %s336_s24 = scalar_lea.vmem %s1318_s3, %s710_s27  ;;  %s547_s25 = sshll.u32 %s329_s21, 4  ;;  %s548_s25 = int_to_ptr.vmem [resolvable:$true] %s547_s25 }
  0x6b   : > { %727 = vmatmul.mubr.msk.f32.vlgmr.msra.gmra.mxu0 %vm343_vm1, %v340_v3  ;;  %v420_v4 = vld [vmem:[%s336_s24] sm:$0x3]  ;;  %s905_s7 = scalar_lea.vmem %s548_s25, 128  ;;  %s911_s15 = scalar_lea.vmem %s910_s1, 256 }
  0x6c   : > { %vm421_vm2 = vnez %v420_v4  ;;  %p906_p7 = scmp.ne.s32.totalorder %s548_s25, %s905_s7  ;;  %p912_p12 = scmp.lt.s32.totalorder %s548_s25, %s910_s1 }
  0x6d   : > { %v422_v6 = vsel %vm421_vm2, 16843009, %v1026_v5  ;;  %p913_p0 = scmp.lt.s32.totalorder %s911_s15, %s905_s7 }
  0x6e   : > { %v423_v7 = vunpack.c.0.s8 %v422_v6  ;;  %p907_p11 = pnand %p906_p7, %p1190_p5 }
  0x6f   : > { %p914_p1 = por %p913_p0, %p912_p12 }
  0x70   : > { %vm424_vm3 = vcmp.ne.s32.totalorder %v423_v7, 0  ;;  %p908_p10 = pneg %p907_p11 }
  0x72   : > { %p915_p3 = pnand %p914_p1, %p908_p10 }
 0x12b   : > { %v416_v8 = vpop.f32.mrf.mxu0 }
 0x12c   : > { %v425_v9 = vsel %vm424_vm3, -1e+30, %v416_v8 }
 0x12d   : > { %v728_v10 = vpop.f32.mrf.mxu0  ;;  %v427_v11 = vsel %vm426_vm4, %v425_v9, -inf }
 0x12e   : > { %428 = vmax.xlane.f32.xlu0 %v427_v11 }
 0x1b7   : > { %v429_v12 = vpop.xlane.xlu0 %428 }
 0x1b8   : > { %v430_v13 = vsub.f32 %v425_v9, %v429_v12 }
 0x1ba   : > { %v431_v14 = vmul.f32 1.442695, %v430_v13 }
 0x1bc   : > { %817 = vpow2.f32 %v431_v14 }
 0x1c9   : > { %v818_v15 = vpop.eup %817 }
 0x1ca   : > { %v433_v16 = vsel %vm426_vm4, %v818_v15, 0.0 }
 0x1cb   : > { %434 = vadd.xlane.f32.xlu0 %v433_v16 }
 0x254   : > { %v435_v18 = vpop.xlane.xlu0 %434 }
 0x255   : > { %819 = vrcp.f32 %v435_v18 }
 0x262   : > { %v820_v19 = vpop.eup %819 }
 0x263   : > { %v437_v20 = vmul.f32 %v820_v19, %v818_v15 }
 0x265   : > { %732 = vmatmul.mubr.msk.f32.vlgmr.msra.gmra.mxu1 %vm426_vm4, %v437_v20  ;;  %438 = vst.msk [vmem:[%s329_s21] sm:$0xff] %vm426_vm4, %v437_v20 }
 0x266   : > { %918 = shalt.err (!%p915_p3)
}
 0x267   : > { %s919_s27 = scalar_lea.hbm %s545_s8, 128  ;;  %s923_s24 = scalar_lea.hbm %s1320_s5, 256 }
 0x268   : > { %p920_p13 = scmp.ne.s32.totalorder %s545_s8, %s919_s27  ;;  %p924_p4 = scmp.lt.s32.totalorder %s545_s8, %s1320_s5 }
 0x269   : > { %p925_p6 = scmp.lt.s32.totalorder %s923_s24, %s919_s27 }
 0x26a   : > { %p921_p9 = pnand %p920_p13, %p1190_p5 }
 0x26b   : > { %p926_p8 = por %p925_p6, %p924_p4 }
 0x26c   : > { %p922_p2 = pneg %p921_p9 }
 0x26e   : > { %p927_p7 = pnand %p926_p8, %p922_p2 }
 0x270   : > { %930 = shalt.err (!%p927_p7)
}
 0x271   : > { %741 = dma.vmem_to_hbm [thread:$0]  (%p1190_p5), %s548_s25, 128, %s545_s8, %s519_s9  }
 0x272   : > { %s322_s26 = scalar_lea.vmem [#allocation8], %s1220_s13  ;;  %s1266_s15 = scalar_lea.hbm %s1319_s4, %s1108_s29 }
 0x273   : > { %s533_s7 = sshll.u32 %s322_s26, 4  ;;  %s514_s27 = scalar_lea.sflag [#allocation4], %s1217_s11  ;;  %s1268_s7 = int_to_ptr.vmem [resolvable:$true] %s533_s7 }
 0x274   : > { %s931_s30 = scalar_lea.vmem %s1268_s7, 128  ;;  %s1028_s13 = smov [#allocation8]  }
 0x275   : > { %p932_p11 = scmp.ne.s32.totalorder %s1268_s7, %s931_s30  ;;  %s935_s25 = sshll.u32 %s1028_s13, 4  ;;  %s936_s25 = int_to_ptr.vmem [resolvable:$false] %s935_s25 }
 0x276   : > { %s937_s29 = scalar_lea.vmem %s936_s25, 256  ;;  %p938_p0 = scmp.lt.s32.totalorder %s1268_s7, %s936_s25 }
 0x277   : > { %p933_p10 = pnand %p932_p11, %p1190_p5  ;;  %p939_p1 = scmp.lt.s32.totalorder %s937_s29, %s931_s30 }
 0x279   : > { %p934_p12 = pneg %p933_p10  ;;  %p940_p3 = por %p939_p1, %p938_p0 }
 0x27b   : > { %p941_p13 = pnand %p940_p3, %p934_p12 }
 0x325   : > { %v508_v21 = vpop.f32.mrf.mxu1 }
 0x326   : > { %512 = vst.msk [vmem:[%s322_s26] sm:$0xff] %vm343_vm1, %v508_v21 }
 0x327   : > { %v733_v22 = vpop.f32.mrf.mxu1 }
 0x328   : > { %944 = shalt.err (!%p941_p13)
}
 0x329   : > { %s945_s8 = scalar_lea.hbm %s1266_s15, 128  ;;  %s949_s17 = scalar_lea.hbm %s1319_s4, 256 }
 0x32a   : > { %p946_p9 = scmp.ne.s32.totalorder %s1266_s15, %s945_s8  ;;  %p950_p6 = scmp.lt.s32.totalorder %s1266_s15, %s1319_s4 }
 0x32b   : > { %p951_p8 = scmp.lt.s32.totalorder %s949_s17, %s945_s8 }
 0x32c   : > { %p947_p2 = pnand %p946_p9, %p1190_p5 }
 0x32d   : > { %p952_p7 = por %p951_p8, %p950_p6 }
 0x32e   : > { %p948_p4 = pneg %p947_p2 }
 0x330   : > { %p953_p11 = pnand %p952_p7, %p948_p4 }
 0x332   : > { %956 = shalt.err (!%p953_p11)
}
 0x333   : > { %740 = dma.vmem_to_hbm [thread:$0]  (%p1190_p5), %s1268_s7, 128, %s1266_s15, %s514_s27  }
 0x334 PF: > { %s559_s6 = sand.u32 1, %s999_s18   ;;  %p1336_p10 = scmp.ne.s32.totalorder %s1327_s28, 0 }
 0x335   : > { %p1337_p12 = scmp.ge.s32.totalorder %s1019_s23, 2  ;;  %s560_s26 = scalar_lea.sflag [#allocation4], %s559_s6 }
 0x337   : > { %p756_p0 = pnand %p1337_p12, %p1336_p10 }
 0x339   : > { %p757_p1 = pneg %p756_p0 }
 0x33b   : > { %990 = dma.done.wait (%p757_p1), %s560_s26, 128  }
 0x33c   : > { %992 = vsyncadd (%p757_p1), %s560_s26, 4294967168  ;;  %s569_s16 = scalar_lea.sflag [#allocation10], %s559_s6 }
 0x33d   : > { %994 = dma.done.wait (%p757_p1), %s569_s16, 128  }
 0x33e   : > { %996 = vsyncadd (%p757_p1), %s569_s16, 4294967168  ;;  %s26_s23 = sadd.s32 1, %s1019_s23   ;;  %s1338_s18 = smov %s1003_s19 }
 0x33f   : > { %p23_p3 = scmp.ge.s32.totalorder %s26_s23, 4   ;;  %s1339_s19 = smov %s1007_s20 }
 0x340   : > { %s1340_s20 = smov %s1199_s12  ;;  %s1341_s21 = smov %s1015_s22 }
 0x341   : > { %s1342_s22 = smov %s1344_s10  ;;  %25 = sbr.rel (!%p23_p3) target bundleno = 11 (0xb), region = 111 }
 0x346   :  { %574 = vsyncpa [#allocation3], 1 }
 0x347   :  { %576 = vsyncpa [#allocation3 + $0x1], 1 }
 0x348   :  { %577 = vsyncpa [#allocation6], 1 }
 0x349   :  { %578 = vsyncpa [#allocation4], 1 }
 0x34a   :  { %580 = vsyncpa [#allocation4 + $0x1], 1 }
 0x34b   :  { %581 = vsyncpa [#allocation10], 1 }
 0x34c   :  { %583 = vsyncpa [#allocation10 + $0x1], 1 }

// kernel: tpu_custom_call.1
= control target key start
LH: loop header
LB: loop body
LE: loop exit
PB: predicated region body
PF: predicated region fallthrough
CT: control target
= control target key end

     0   :  { %s1355_s0 = inlined_call_operand.hbm [shape: f32[2,8,32], index: 0, kind: input, shape index: {}]   ;;  %s1356_s1 = inlined_call_operand.hbm [shape: f32[2,8,32], index: 1, kind: input, shape index: {}]   ;;  %s1357_s2 = inlined_call_operand.hbm [shape: f32[2,8,32], index: 2, kind: input, shape index: {}]   ;;  %s1358_s3 = inlined_call_operand.vmem [shape: s8[2,8,8], index: 3, kind: input, shape index: {}]   ;;  %s1359_s4 = inlined_call_operand.hbm [shape: f32[2,8,32], index: 4, kind: output, shape index: {0}]   ;;  %s1360_s5 = inlined_call_operand.hbm [shape: f32[2,8,8], index: 5, kind: output, shape index: {1}]  }
   0x1   :  { %1366 = sst [smem:[#allocation19_spill]] %s1356_s1 }
   0x2   :  { %11 = vsyncpa [#allocation3], 0 }
   0x3   :  { %13 = vsyncpa [#allocation3 + $0x1], 0 }
   0x4   :  { %14 = vsyncpa [#allocation6], 0 }
   0x5   :  { %16 = vsyncpa [#allocation6 + $0x1], 0 }
   0x6   :  { %17 = vsyncpa [#allocation4], 0 }
   0x7   :  { %19 = vsyncpa [#allocation4 + $0x1], 0 }
   0x8   :  { %20 = vsyncpa [#allocation10], 0 }
   0x9   :  { %22 = vsyncpa [#allocation10 + $0x1], 0  ;;  %s1112_s18 = smov 0   ;;  %s1114_s19 = smov 0  }
   0xa   :  { %s1116_s20 = smov 0   ;;  %s1118_s21 = smov 0  }
   0xb   :  { %s1120_s22 = smov 0   ;;  %s1122_s23 = smov 0  }
   0xc LB: > { %1367 = sst [smem:[#allocation15_spill]] %s1068_s22  ;;  %s1143_s24 = sadd.s32 4294967295, %s1072_s23   ;;  %s1072_s23 = sphi %s1122_s23, %s28_s23   ;;  %s1068_s22 = sphi %s1120_s22, %s1383_s22   ;;  %s1064_s21 = sphi %s1118_s21, %s1382_s21   ;;  %s1060_s20 = sphi %s1116_s20, %s1386_s20   ;;  %s1056_s19 = sphi %s1114_s19, %s1385_s19   ;;  %s1052_s18 = sphi %s1112_s18, %s1384_s18  }
   0xd   : > { %1368 = sst [smem:[#allocation16_spill]] %s1072_s23  ;;  %s751_s25 = sadd.s32 4294967294, %s1072_s23  }
   0xe   : > { %s40_s26 = sadd.s32 1, %s1068_s22  ;;  %s49_s27 = sadd.s32 1, %s1060_s20 }
   0xf   : > { %p42_p0 = scmp.ge.s32.totalorder %s40_s26, 2  ;;  %p56_p1 = scmp.ne.s32.totalorder %s1060_s20, %s1056_s19 }
  0x10   : > { %p57_p2 = scmp.eq.s32.totalorder %s1072_s23, 0  ;;  %p62_p3 = scmp.ne.s32.totalorder %s1056_s19, %s1052_s18 }
  0x11   : > { %s1388_s26 = smov (%p42_p0, %s40_s26), 0  ;;  %p63_p5 = scmp.eq.s32.totalorder %s1143_s24, 0 }
  0x12   : > { %1369 = sst [smem:[#allocation17_spill]] %s1388_s26  ;;  %p1155_p4 = por %p57_p2, %p56_p1 }
  0x13   : > { %s44_s29 = ssub.s32 %s1068_s22, %s1388_s26  ;;  %p168_p6 = scmp.eq.s32.totalorder %s1143_s24, 1 }
  0x14   : > { %p47_p7 = scmp.eq.s32.totalorder %s44_s29, 0  ;;  %p1163_p8 = por %p63_p5, %p62_p3 }
  0x15   : > { %p1167_p9 = por %p168_p6, %p56_p1  ;;  %p174_p10 = scmp.eq.s32.totalorder %s751_s25, 1 }
  0x16   : > { %s1172_s7 = scalar_select %p47_p7, %s1060_s20, %s49_s27  }
  0x17   : > { %p1174_p11 = por %p174_p10, %p62_p3  ;;  %p817_p13 = scmp.lt.s32.totalorder %s1072_s23, 2 }
  0x18   : > { %1373 = sst [smem:[#allocation18_spill]] %s1172_s7  ;;  %s1361_s9 = sand.u32 1, %s1060_s20  }
  0x19   : > { %s1183_s10 = sshll.u32 %s1361_s9, 3  ;;  %s1186_s11 = sshll.u32 %s1068_s22, 7 }
  0x1a   : > { %p1190_p0 = pnand %p817_p13, %p1155_p4  ;;  %s241_s13 = sand.u32 1, %s1072_s23  }
  0x1b   : > { %s1376_s1 = sld [smem:[#allocation19_spill]]  ;;  %s245_s17 = scalar_lea.vmem [#allocation5], %s1183_s10 }
  0x1c   : > { %s252_s25 = sshll.u32 %s245_s17, 4  ;;  %p760_p1 = scmp.ge.s32.totalorder %s1072_s23, 1  ;;  %s253_s25 = int_to_ptr.vmem [resolvable:$true] %s252_s25 }
  0x1d   : > { %p285_p2 = scmp.lt.s32.totalorder %s1072_s23, 3  ;;  %s1202_s27 = scalar_lea.sflag [#allocation6], %s241_s13 }
  0x1e   : > { %p876_p3 = pneg %p1190_p0  ;;  %s887_s28 = scalar_lea.vmem %s253_s25, 128 }
  0x1f   : > { %p888_p4 = scmp.ne.s32.totalorder %s253_s25, %s887_s28  ;;  %s1074_s29 = smov [#allocation5]  }
  0x20   : > { %s892_s9 = sshll.u32 %s1074_s29, 4  ;;  %s893_s9 = int_to_ptr.vmem [resolvable:$false] %s892_s9 }
  0x21   : > { %s250_s16 = scalar_lea.hbm %s1376_s1, %s1186_s11  ;;  %p890_p5 = pnand %p888_p4, %p876_p3 }
  0x22   : > { %s894_s14 = scalar_lea.vmem %s893_s9, 256  ;;  %p895_p7 = scmp.lt.s32.totalorder %s253_s25, %s893_s9 }
  0x23   : > { %p891_p6 = pneg %p890_p5  ;;  %p896_p10 = scmp.lt.s32.totalorder %s894_s14, %s887_s28 }
  0x25   : > { %p897_p13 = por %p896_p10, %p895_p7 }
  0x27   : > { %p898_p12 = pnand %p897_p13, %p891_p6 }
  0x29   : > { %901 = shalt.err (!%p898_p12)
}
  0x2a   : > { %806 = dma.hbm_to_vmem [thread:$0]  (!%p1190_p0), %s250_s16, 128, %s253_s25, %s1202_s27  }
  0x2b   : > { %p1216_p4 = pnand %p760_p1, %p285_p2  ;;  %s232_s17 = scalar_lea.hbm %s1355_s0, %s1186_s11 }
  0x2c   : > { %s226_s28 = scalar_lea.vmem [#allocation2], %s1183_s10  ;;  %s268_s26 = scalar_lea.hbm %s1357_s2, %s1186_s11 }
  0x2d   : > { %s234_s29 = sshll.u32 %s226_s28, 4  ;;  %s1378_s22 = sand.u32 1, %s1060_s20   ;;  %s235_s29 = int_to_ptr.vmem [resolvable:$true] %s234_s29 }
  0x2e   : > { %s223_s7 = scalar_lea.sflag [#allocation3], %s1378_s22  ;;  %s915_s16 = scalar_lea.vmem %s235_s29, 128 }
  0x2f   : > { %p916_p12 = scmp.ne.s32.totalorder %s235_s29, %s915_s16  ;;  %s1075_s25 = smov [#allocation2]  }
  0x30   : > { %s920_s23 = sshll.u32 %s1075_s25, 4  ;;  %s921_s23 = int_to_ptr.vmem [resolvable:$false] %s920_s23 }
  0x31   : > { %p918_p1 = pnand %p916_p12, %p876_p3  ;;  %s922_s9 = scalar_lea.vmem %s921_s23, 256 }
  0x32   : > { %p923_p5 = scmp.lt.s32.totalorder %s235_s29, %s921_s23  ;;  %p924_p6 = scmp.lt.s32.totalorder %s922_s9, %s915_s16 }
  0x33   : > { %p919_p2 = pneg %p918_p1 }
  0x34   : > { %p925_p7 = por %p924_p6, %p923_p5 }
  0x36   : > { %p926_p10 = pnand %p925_p7, %p919_p2 }
  0x38   : > { %929 = shalt.err (!%p926_p10)
}
  0x39   : > { %803 = dma.hbm_to_vmem [thread:$0]  (!%p1190_p0), %s232_s17, 128, %s235_s29, %s223_s7  }
  0x3a   : > { %s263_s1 = scalar_lea.vmem [#allocation7], %s1183_s10  ;;  %s1076_s28 = smov [#allocation7]  }
  0x3b   : > { %s270_s22 = sshll.u32 %s263_s1, 4  ;;  %s948_s23 = sshll.u32 %s1076_s28, 4  ;;  %s271_s22 = int_to_ptr.vmem [resolvable:$true] %s270_s22  ;;  %s949_s23 = int_to_ptr.vmem [resolvable:$false] %s948_s23 }
  0x3c   : > { %s943_s15 = scalar_lea.vmem %s271_s22, 128  ;;  %s950_s14 = scalar_lea.vmem %s949_s23, 256 }
  0x3d   : > { %p944_p13 = scmp.ne.s32.totalorder %s271_s22, %s943_s15  ;;  %p951_p2 = scmp.lt.s32.totalorder %s271_s22, %s949_s23 }
  0x3e   : > { %p952_p5 = scmp.lt.s32.totalorder %s950_s14, %s943_s15 }
  0x3f   : > { %p946_p12 = pnand %p944_p13, %p876_p3 }
  0x40   : > { %p953_p6 = por %p952_p5, %p951_p2 }
  0x41   : > { %p947_p1 = pneg %p946_p12 }
  0x43   : > { %p954_p7 = pnand %p953_p6, %p947_p1 }
  0x45   : > { %957 = shalt.err (!%p954_p7)
}
  0x46   : > { %809 = dma.hbm_to_vmem [thread:$0]  (!%p1190_p0), %s268_s26, 128, %s271_s22, %s1202_s27  }
  0x47   : > { %289 = sbr.rel (%p1216_p4) target bundleno = 799 (0x31f), region = 36  ;;  %s1251_s17 = sand.u32 (!%p1216_p4), 1, %s1056_s19  }
  0x48   : > { %s1254_s29 = sshll.u32 (!%p1216_p4), %s1251_s17, 3  ;;  %s292_s12 = scalar_lea.sflag (!%p1216_p4), [#allocation3], %s1251_s17 }
  0x49   : > { %s295_s16 = scalar_lea.vmem (!%p1216_p4), [#allocation2], %s1254_s29 }
  0x4c   : > { %1035 = dma.done.wait (%p1163_p8), %s292_s12, 128  }
  0x4d   : > { %1037 = vsyncadd (%p1163_p8), %s292_s12, 4294967168  ;;  %s300_s26 = sand.u32 1, %s1143_s24   ;;  %s304_s27 = scalar_lea.vmem [#allocation5], %s1254_s29 }
  0x4e   : > { %s301_s11 = scalar_lea.sflag [#allocation6], %s300_s26 }
  0x4f   : > { %1039 = dma.done.wait (%p1163_p8), %s301_s11, 256  }
  0x50   : > { %1041 = vsyncadd (%p1163_p8), %s301_s11, 4294967040  ;;  %v1077_v0 = vmov 0.0   ;;  %vm1078_vm0 = vmmov 0   ;;  %vm375_vm1 = vcmask 261120   ;;  %v373_v1 = vld [vmem:[%s304_s27] sm:$0xff]  ;;  %v371_v2 = vld [vmem:[%s295_s16] sm:$0xff] }
  0x51   : > { %780 = vmatprep.subr.mxu0 %v1077_v0  ;;  %782 = vmatprep.mubr.msk.f32.mxu0 %vm1078_vm0, %v1077_v0  ;;  %v372_v3 = vmul.f32 0.17677669, %v371_v2  ;;  %p362_p0 = scmp.lt.s32.totalorder %s1064_s21, 1  ;;  %v1079_v5 = vmov 0   ;;  %vm458_vm4 = vcmask 64512   ;;  %s313_s1 = scalar_lea.vmem [#allocation7], %s1254_s29 }
  0x52   : > { %785 = vmatprep.subr.mxu1 %v1077_v0  ;;  %787 = vmatprep.mubr.msk.f32.mxu1 %vm1078_vm0, %v1077_v0  ;;  %v374_v17 = vld [vmem:[%s313_s1] sm:$0xff]  ;;  %s361_s22 = scalar_lea.vmem [#allocation9], %s1254_s29  ;;  %s772_s15 = sshll.u32 %s1064_s21, 7 }
  0x53   : > { %781 = vmatpush3.xpose.msk.msra.mxu0 %vm375_vm1, %v373_v1  ;;  %s363_s24 = scalar_select %p362_p0, %s1064_s21, 1  ;;  %786 = vmatpush3.msra.mxu1 %v374_v17 }
  0x54   : > { %s577_s14 = scalar_lea.hbm %s1360_s5, %s772_s15  ;;  %s579_s7 = sshll.u32 %s361_s22, 4  ;;  %s580_s7 = int_to_ptr.vmem [resolvable:$true] %s579_s7 }
  0x55   : > { %s766_s30 = sshll.u32 %s363_s24, 1  ;;  %s551_s10 = scalar_lea.sflag [#allocation10], %s1251_s17 }
  0x56   : > { %783 = vmatmul.mubr.msk.f32.vlgmr.msra.gmra.mxu0 %vm375_vm1, %v372_v3  ;;  %s368_s9 = scalar_lea.vmem %s1358_s3, %s766_s30  ;;  %s958_s12 = scalar_lea.vmem %s580_s7, 128 }
  0x57   : > { %v452_v4 = vld [vmem:[%s368_s9] sm:$0x3]  ;;  %p959_p8 = scmp.ne.s32.totalorder %s580_s7, %s958_s12  ;;  %s1080_s16 = smov [#allocation9]  }
  0x58   : > { %vm453_vm2 = vnez %v452_v4  ;;  %s962_s26 = sshll.u32 %s1080_s16, 4  ;;  %s963_s26 = int_to_ptr.vmem [resolvable:$false] %s962_s26 }
  0x59   : > { %v454_v6 = vsel %vm453_vm2, 16843009, %v1079_v5  ;;  %p960_p3 = pnand %p959_p8, %p1167_p9  ;;  %s964_s11 = scalar_lea.vmem %s963_s26, 256 }
  0x5a   : > { %v455_v7 = vunpack.c.0.s8 %v454_v6  ;;  %p965_p10 = scmp.lt.s32.totalorder %s580_s7, %s963_s26  ;;  %p966_p13 = scmp.lt.s32.totalorder %s964_s11, %s958_s12 }
  0x5b   : > { %p961_p4 = pneg %p960_p3 }
  0x5c   : > { %vm456_vm3 = vcmp.ne.s32.totalorder %v455_v7, 0  ;;  %p967_p12 = por %p966_p13, %p965_p10 }
  0x5e   : > { %p968_p1 = pnand %p967_p12, %p961_p4 }
 0x116   : > { %v448_v8 = vpop.f32.mrf.mxu0 }
 0x117   : > { %v457_v9 = vsel %vm456_vm3, -1e+30, %v448_v8 }
 0x118   : > { %v784_v10 = vpop.f32.mrf.mxu0  ;;  %v459_v11 = vsel %vm458_vm4, %v457_v9, -inf }
 0x119   : > { %460 = vmax.xlane.f32.xlu0 %v459_v11 }
 0x1a2   : > { %v461_v12 = vpop.xlane.xlu0 %460 }
 0x1a3   : > { %v462_v13 = vsub.f32 %v457_v9, %v461_v12 }
 0x1a5   : > { %v463_v14 = vmul.f32 1.442695, %v462_v13 }
 0x1a7   : > { %870 = vpow2.f32 %v463_v14 }
 0x1b4   : > { %v871_v15 = vpop.eup %870 }
 0x1b5   : > { %v465_v16 = vsel %vm458_vm4, %v871_v15, 0.0 }
 0x1b6   : > { %466 = vadd.xlane.f32.xlu0 %v465_v16 }
 0x23f   : > { %v467_v18 = vpop.xlane.xlu0 %466 }
 0x240   : > { %872 = vrcp.f32 %v467_v18 }
 0x24d   : > { %v873_v19 = vpop.eup %872 }
 0x24e   : > { %v469_v20 = vmul.f32 %v873_v19, %v871_v15 }
 0x250   : > { %788 = vmatmul.mubr.msk.f32.vlgmr.msra.gmra.mxu1 %vm458_vm4, %v469_v20  ;;  %470 = vst.msk [vmem:[%s361_s22] sm:$0xff] %vm458_vm4, %v469_v20 }
 0x251   : > { %971 = shalt.err (!%p968_p1)
}
 0x252   : > { %s972_s27 = scalar_lea.hbm %s577_s14, 128  ;;  %s976_s13 = scalar_lea.hbm %s1360_s5, 256 }
 0x253   : > { %p973_p2 = scmp.ne.s32.totalorder %s577_s14, %s972_s27  ;;  %p977_p7 = scmp.lt.s32.totalorder %s577_s14, %s1360_s5 }
 0x254   : > { %p978_p0 = scmp.lt.s32.totalorder %s976_s13, %s972_s27 }
 0x255   : > { %p974_p5 = pnand %p973_p2, %p1167_p9 }
 0x256   : > { %p979_p8 = por %p978_p0, %p977_p7 }
 0x257   : > { %p975_p6 = pneg %p974_p5 }
 0x259   : > { %p980_p3 = pnand %p979_p8, %p975_p6 }
 0x25b   : > { %983 = shalt.err (!%p980_p3)
}
 0x25c   : > { %797 = dma.vmem_to_hbm [thread:$0]  (%p1167_p9), %s580_s7, 128, %s577_s14, %s551_s10  }
 0x25d   : > { %s354_s1 = scalar_lea.vmem [#allocation8], %s1254_s29  ;;  %s1306_s12 = scalar_lea.hbm %s1359_s4, %s772_s15 }
 0x25e   : > { %s565_s22 = sshll.u32 %s354_s1, 4  ;;  %s546_s16 = scalar_lea.sflag [#allocation4], %s1251_s17  ;;  %s1308_s22 = int_to_ptr.vmem [resolvable:$true] %s565_s22 }
 0x25f   : > { %s984_s26 = scalar_lea.vmem %s1308_s22, 128  ;;  %s1081_s21 = smov [#allocation8]  }
 0x260   : > { %p985_p4 = scmp.ne.s32.totalorder %s1308_s22, %s984_s26  ;;  %s988_s29 = sshll.u32 %s1081_s21, 4  ;;  %s989_s29 = int_to_ptr.vmem [resolvable:$false] %s988_s29 }
 0x261   : > { %s990_s15 = scalar_lea.vmem %s989_s29, 256  ;;  %p991_p12 = scmp.lt.s32.totalorder %s1308_s22, %s989_s29 }
 0x262   : > { %p986_p10 = pnand %p985_p4, %p1167_p9  ;;  %p992_p1 = scmp.lt.s32.totalorder %s990_s15, %s984_s26 }
 0x264   : > { %p987_p13 = pneg %p986_p10  ;;  %p993_p2 = por %p992_p1, %p991_p12 }
 0x266   : > { %p994_p5 = pnand %p993_p2, %p987_p13 }
 0x310   : > { %v540_v21 = vpop.f32.mrf.mxu1 }
 0x311   : > { %544 = vst.msk [vmem:[%s354_s1] sm:$0xff] %vm375_vm1, %v540_v21 }
 0x312   : > { %v789_v22 = vpop.f32.mrf.mxu1 }
 0x313   : > { %997 = shalt.err (!%p994_p5)
}
 0x314   : > { %s998_s14 = scalar_lea.hbm %s1306_s12, 128  ;;  %s1002_s10 = scalar_lea.hbm %s1359_s4, 256 }
 0x315   : > { %p999_p6 = scmp.ne.s32.totalorder %s1306_s12, %s998_s14  ;;  %p1003_p8 = scmp.lt.s32.totalorder %s1306_s12, %s1359_s4 }
 0x316   : > { %p1004_p3 = scmp.lt.s32.totalorder %s1002_s10, %s998_s14 }
 0x317   : > { %p1000_p7 = pnand %p999_p6, %p1167_p9 }
 0x318   : > { %p1005_p4 = por %p1004_p3, %p1003_p8 }
 0x319   : > { %p1001_p0 = pneg %p1000_p7 }
 0x31b   : > { %p1006_p10 = pnand %p1005_p4, %p1001_p0 }
 0x31d   : > { %1009 = shalt.err (!%p1006_p10)
}
 0x31e   : > { %796 = dma.vmem_to_hbm [thread:$0]  (%p1167_p9), %s1308_s22, 128, %s1306_s12, %s546_s16  }
 0x31f PF: > { %s1379_s24 = sld [smem:[#allocation16_spill]]  ;;  %s591_s30 = sand.u32 1, %s1052_s18  }
 0x320   : > { %s592_s13 = scalar_lea.sflag [#allocation4], %s591_s30 }
 0x325   : > { %p1380_p13 = scmp.ge.s32.totalorder %s1379_s24, 2 }
 0x327   : > { %p811_p12 = pnand %p1380_p13, %p1174_p11 }
 0x329   : > { %p812_p1 = pneg %p811_p12 }
 0x32b   : > { %1043 = dma.done.wait (%p812_p1), %s592_s13, 128  }
 0x32c   : > { %1045 = vsyncadd (%p812_p1), %s592_s13, 4294967168  ;;  %s601_s25 = scalar_lea.sflag [#allocation10], %s591_s30 }
 0x32d   : > { %1047 = dma.done.wait (%p812_p1), %s601_s25, 128  }
 0x32e   : > { %1049 = vsyncadd (%p812_p1), %s601_s25, 4294967168  ;;  %s28_s23 = sadd.s32 1, %s1379_s24   ;;  %s1381_s6 = sld [smem:[#allocation18_spill]] }
 0x32f   : > { %p25_p2 = scmp.ge.s32.totalorder %s28_s23, 4   ;;  %s1382_s21 = sld [smem:[#allocation15_spill]] }
 0x330   : > { %s1383_s22 = sld [smem:[#allocation17_spill]]  ;;  %s1384_s18 = smov %s1056_s19 }
 0x331   : > { %s1385_s19 = smov %s1060_s20  ;;  %27 = sbr.rel (!%p25_p2) target bundleno = 12 (0xc), region = 125 }
 0x334   : > { %s1386_s20 = smov %s1381_s6 }
 0x336   :  { %606 = vsyncpa [#allocation3], 1 }
 0x337   :  { %608 = vsyncpa [#allocation3 + $0x1], 1 }
 0x338   :  { %609 = vsyncpa [#allocation6], 1 }
 0x339   :  { %611 = vsyncpa [#allocation6 + $0x1], 1 }
 0x33a   :  { %612 = vsyncpa [#allocation4], 1 }
 0x33b   :  { %614 = vsyncpa [#allocation4 + $0x1], 1 }
 0x33c   :  { %615 = vsyncpa [#allocation10], 1 }
 0x33d   :  { %617 = vsyncpa [#allocation10 + $0x1], 1 }

</bundles_post_ra>
